<compile_context>
chip_gen: v6e
topology: v6e:2x2x1
jax: 0.10.0
libtpu: 0.0.40
codegen_flags: <defaults>
</compile_context>

<pallas_src>
import functools

import jax
import jax.numpy as jnp
from jax.experimental import pallas as pl
from jax.experimental.pallas import tpu as pltpu


def _mlp_kernel(x_ref, w1_ref, b1_ref, w2_ref, b2_ref,
                w3_ref, b3_ref, w4_ref, b4_ref, o_ref):
    # Transposed layout: every tensor is (features, batch_tile); batch on lanes.
    x = x_ref[...]                                     # (2, tm)

    # Layer 1 (in_features=2): K=2 wastes the MXU -> two VPU FMAs.
    w1 = w1_ref[...]                                   # (32, 2)
    h = w1[:, 0:1] * x[0:1, :] + w1[:, 1:2] * x[1:2, :] + b1_ref[...]
    h = jnp.maximum(h, 0.0)                            # (32, tm)

    # Layers 2 & 3: real MXU matmuls, N (= batch tile) on lanes.
    h = jnp.dot(w2_ref[...], h, preferred_element_type=jnp.float32) + b2_ref[...]
    h = jnp.maximum(h, 0.0)                            # (64, tm)
    h = jnp.dot(w3_ref[...], h, preferred_element_type=jnp.float32) + b3_ref[...]
    h = jnp.maximum(h, 0.0)                            # (128, tm)

    # Output layer (out_features=1): single-row MXU result is wasteful ->
    # VPU multiply + cross-sublane reduce (XLU), then EUP sigmoid.
    logits = jnp.sum(w4_ref[...] * h, axis=0, keepdims=True) + b4_ref[...]
    o_ref[...] = jax.nn.sigmoid(logits).astype(o_ref.dtype)   # (1, tm), lane-dense


@functools.partial(jax.jit, static_argnames=("tm",))
def dummy_discriminator(x, params, tm=2048):
    """Forward pass of DummyDiscriminator.

    x:      (B, 2) float32
    params: dict with w1 (32,2), w2 (64,32), w3 (128,64), w4 (128,1) and
            b1 (32,1), b2 (64,1), b3 (128,1), b4 (1,1)  [weights in PyTorch
            (out, in) layout; layer_out's weight stored as a column]
    returns (B, 1) float32 in (0, 1)
    """
    w1, b1 = params["w1"], params["b1"]
    w2, b2 = params["w2"], params["b2"]
    w3, b3 = params["w3"], params["b3"]
    w4, b4 = params["w4"], params["b4"]

    B = x.shape[0]
    # Lane-dense batch tile: multiple of 128, but never (much) larger than B
    # itself, so small batches don't pay for a huge padded tile.
    tm_eff = min(tm, max(128, pl.cdiv(B, 128) * 128))
    b_pad = pl.cdiv(B, tm_eff) * tm_eff

    # Batch-on-lanes layout.  The transpose+pad is a single tiny fused XLA
    # copy (x is only 8 bytes/row); padded columns are computed and dropped.
    x_t = jnp.pad(x.T, ((0, 0), (0, b_pad - B)))       # (2, b_pad)

    grid = (b_pad // tm_eff,)

    def full(arr):
        # Whole (tiny) parameter array resident in VMEM for every batch tile.
        return pl.BlockSpec(arr.shape, lambda i: (0,) * arr.ndim)

    out = pl.pallas_call(
        _mlp_kernel,
        out_shape=jax.ShapeDtypeStruct((1, b_pad), jnp.float32),
        grid_spec=pltpu.PrefetchScalarGridSpec(
            num_scalar_prefetch=0,
            grid=grid,
            in_specs=[
                pl.BlockSpec((2, tm_eff), lambda i: (0, i)),
                full(w1), full(b1),
                full(w2), full(b2),
                full(w3), full(b3),
                full(w4), full(b4),
            ],
            out_specs=pl.BlockSpec((1, tm_eff), lambda i: (0, i)),
        ),
        compiler_params=pltpu.CompilerParams(
            dimension_semantics=("parallel",)),
    )(x_t, w1, b1, w2, b2, w3, b3, w4, b4)

    return out[0, :B].reshape(B, 1)


def init_params(key):
    """PyTorch nn.Linear default U(-1/sqrt(fan_in), +) init, stored in the
    kernel's native layout: weights (out, in), biases (out, 1); the output
    layer's weight is kept as a (128, 1) column (W_out^T)."""
    dims = [(2, 32), (32, 64), (64, 128), (128, 1)]
    params = {}
    for idx, (fan_in, fan_out) in enumerate(dims, start=1):
        key, kw, kb = jax.random.split(key, 3)
        bound = 1.0 / (fan_in ** 0.5)
        params[f"w{idx}"] = jax.random.uniform(
            kw, (fan_out, fan_in), jnp.float32, -bound, bound)
        params[f"b{idx}"] = jax.random.uniform(
            kb, (fan_out, 1), jnp.float32, -bound, bound)
    # layer_out weight as a column so the kernel does a VPU multiply + reduce.
    params["w4"] = params["w4"].T      # (1, 128) -> (128, 1)
    return params


def _reference(x, params):
    h = jnp.maximum(x @ params["w1"].T + params["b1"].T, 0.0)
    h = jnp.maximum(h @ params["w2"].T + params["b2"].T, 0.0)
    h = jnp.maximum(h @ params["w3"].T + params["b3"].T, 0.0)
    return jax.nn.sigmoid(h @ params["w4"] + params["b4"].T)


if __name__ == "__main__":
    key = jax.random.PRNGKey(0)
    key, kx = jax.random.split(key)
    params = init_params(key)

    batch = 8
    x = jax.random.normal(kx, (batch, 2), jnp.float32)

    out = dummy_discriminator(x, params)
    out = jax.block_until_ready(out)

    ref = _reference(x, params)
    assert out.shape == (batch, 1)
    assert jnp.allclose(out, ref, atol=1e-5, rtol=1e-5)
    print("KERNEL_OK")
</pallas_src>

<mosaic_0001>
module attributes {stable_mosaic.version = 11 : i64} {
  func.func @_mlp_kernel(%arg0: i32, %arg1: memref<2x128xf32, #tpu.memory_space<vmem>>, %arg2: memref<32x2xf32, #tpu.memory_space<vmem>>, %arg3: memref<32x1xf32, #tpu.memory_space<vmem>>, %arg4: memref<64x32xf32, #tpu.memory_space<vmem>>, %arg5: memref<64x1xf32, #tpu.memory_space<vmem>>, %arg6: memref<128x64xf32, #tpu.memory_space<vmem>>, %arg7: memref<128x1xf32, #tpu.memory_space<vmem>>, %arg8: memref<128x1xf32, #tpu.memory_space<vmem>>, %arg9: memref<1x1xf32, #tpu.memory_space<vmem>>, %arg10: memref<1x128xf32, #tpu.memory_space<vmem>>) attributes {dimension_semantics = [#tpu.dimension_semantics<parallel>], iteration_bounds = array<i64: 1>, scalar_prefetch = 0 : i64, scratch_operands = 0 : i64, tpu.core_type = #tpu.core_type<tc>, window_params = [{transform_indices = @transform_0, window_bounds = array<i64: 2, 128>}, {pipeline_mode = #tpu.pipeline_mode<synchronous>, transform_indices = @transform_1, window_bounds = array<i64: 32, 2>}, {pipeline_mode = #tpu.pipeline_mode<synchronous>, transform_indices = @transform_2, window_bounds = array<i64: 32, 1>}, {pipeline_mode = #tpu.pipeline_mode<synchronous>, transform_indices = @transform_3, window_bounds = array<i64: 64, 32>}, {pipeline_mode = #tpu.pipeline_mode<synchronous>, transform_indices = @transform_4, window_bounds = array<i64: 64, 1>}, {pipeline_mode = #tpu.pipeline_mode<synchronous>, transform_indices = @transform_5, window_bounds = array<i64: 128, 64>}, {pipeline_mode = #tpu.pipeline_mode<synchronous>, transform_indices = @transform_6, window_bounds = array<i64: 128, 1>}, {pipeline_mode = #tpu.pipeline_mode<synchronous>, transform_indices = @transform_7, window_bounds = array<i64: 128, 1>}, {pipeline_mode = #tpu.pipeline_mode<synchronous>, transform_indices = @transform_8, window_bounds = array<i64: 1, 1>}, {transform_indices = @transform_9, window_bounds = array<i64: 1, 128>}]} {
    %c0 = arith.constant 0 : index
    %c0_0 = arith.constant 0 : index
    %0 = vector.load %arg1[%c0, %c0_0] : memref<2x128xf32, #tpu.memory_space<vmem>>, vector<2x128xf32>
    %c0_1 = arith.constant 0 : index
    %c0_2 = arith.constant 0 : index
    %1 = vector.load %arg2[%c0_1, %c0_2] : memref<32x2xf32, #tpu.memory_space<vmem>>, vector<32x2xf32>
    %2 = vector.extract_strided_slice %1 {offsets = [0, 0], sizes = [32, 1], strides = [1, 1]} : vector<32x2xf32> to vector<32x1xf32>
    %3 = vector.extract_strided_slice %0 {offsets = [0, 0], sizes = [1, 128], strides = [1, 1]} : vector<2x128xf32> to vector<1x128xf32>
    %4 = vector.broadcast %2 : vector<32x1xf32> to vector<32x128xf32>
    %5 = vector.broadcast %3 : vector<1x128xf32> to vector<32x128xf32>
    %6 = arith.mulf %4, %5 : vector<32x128xf32>
    %7 = vector.extract_strided_slice %1 {offsets = [0, 1], sizes = [32, 1], strides = [1, 1]} : vector<32x2xf32> to vector<32x1xf32>
    %8 = vector.extract_strided_slice %0 {offsets = [1, 0], sizes = [1, 128], strides = [1, 1]} : vector<2x128xf32> to vector<1x128xf32>
    %9 = vector.broadcast %7 : vector<32x1xf32> to vector<32x128xf32>
    %10 = vector.broadcast %8 : vector<1x128xf32> to vector<32x128xf32>
    %11 = arith.mulf %9, %10 : vector<32x128xf32>
    %12 = arith.addf %6, %11 : vector<32x128xf32>
    %c0_3 = arith.constant 0 : index
    %c0_4 = arith.constant 0 : index
    %13 = vector.load %arg3[%c0_3, %c0_4] : memref<32x1xf32, #tpu.memory_space<vmem>>, vector<32x1xf32>
    %14 = vector.broadcast %13 : vector<32x1xf32> to vector<32x128xf32>
    %15 = arith.addf %12, %14 : vector<32x128xf32>
    %cst = arith.constant 0.000000e+00 : f32
    %16 = vector.broadcast %cst : f32 to vector<32x128xf32>
    %17 = arith.maximumf %15, %16 : vector<32x128xf32>
    %c0_5 = arith.constant 0 : index
    %c0_6 = arith.constant 0 : index
    %18 = vector.load %arg4[%c0_5, %c0_6] : memref<64x32xf32, #tpu.memory_space<vmem>>, vector<64x32xf32>
    %cst_7 = arith.constant dense<0.000000e+00> : vector<64x128xf32>
    %19 = tpu.matmul %18, %17, %cst_7 {dimension_numbers = #tpu.dot_dimension_numbers<[1], [0], [0], [1], [0, 0, 1, 1], [], []>} : vector<64x32xf32>, vector<32x128xf32>, vector<64x128xf32> -> vector<64x128xf32>
    %c0_8 = arith.constant 0 : index
    %c0_9 = arith.constant 0 : index
    %20 = vector.load %arg5[%c0_8, %c0_9] : memref<64x1xf32, #tpu.memory_space<vmem>>, vector<64x1xf32>
    %21 = vector.broadcast %20 : vector<64x1xf32> to vector<64x128xf32>
    %22 = arith.addf %19, %21 : vector<64x128xf32>
    %cst_10 = arith.constant 0.000000e+00 : f32
    %23 = vector.broadcast %cst_10 : f32 to vector<64x128xf32>
    %24 = arith.maximumf %22, %23 : vector<64x128xf32>
    %c0_11 = arith.constant 0 : index
    %c0_12 = arith.constant 0 : index
    %25 = vector.load %arg6[%c0_11, %c0_12] : memref<128x64xf32, #tpu.memory_space<vmem>>, vector<128x64xf32>
    %cst_13 = arith.constant dense<0.000000e+00> : vector<128x128xf32>
    %26 = tpu.matmul %25, %24, %cst_13 {dimension_numbers = #tpu.dot_dimension_numbers<[1], [0], [0], [1], [0, 0, 1, 1], [], []>} : vector<128x64xf32>, vector<64x128xf32>, vector<128x128xf32> -> vector<128x128xf32>
    %c0_14 = arith.constant 0 : index
    %c0_15 = arith.constant 0 : index
    %27 = vector.load %arg7[%c0_14, %c0_15] : memref<128x1xf32, #tpu.memory_space<vmem>>, vector<128x1xf32>
    %28 = vector.broadcast %27 : vector<128x1xf32> to vector<128x128xf32>
    %29 = arith.addf %26, %28 : vector<128x128xf32>
    %cst_16 = arith.constant 0.000000e+00 : f32
    %30 = vector.broadcast %cst_16 : f32 to vector<128x128xf32>
    %31 = arith.maximumf %29, %30 : vector<128x128xf32>
    %c0_17 = arith.constant 0 : index
    %c0_18 = arith.constant 0 : index
    %32 = vector.load %arg8[%c0_17, %c0_18] : memref<128x1xf32, #tpu.memory_space<vmem>>, vector<128x1xf32>
    %33 = vector.broadcast %32 : vector<128x1xf32> to vector<128x128xf32>
    %34 = arith.mulf %33, %31 : vector<128x128xf32>
    %cst_19 = arith.constant dense<0.000000e+00> : vector<128xf32>
    %35 = vector.multi_reduction <add>, %34, %cst_19 [0] : vector<128x128xf32> to vector<128xf32>
    %36 = vector.shape_cast %35 : vector<128xf32> to vector<1x128xf32>
    %c0_20 = arith.constant 0 : index
    %c0_21 = arith.constant 0 : index
    %37 = vector.load %arg9[%c0_20, %c0_21] : memref<1x1xf32, #tpu.memory_space<vmem>>, vector<1x1xf32>
    %38 = vector.broadcast %37 : vector<1x1xf32> to vector<1x128xf32>
    %39 = arith.addf %36, %38 : vector<1x128xf32>
    %40 = arith.negf %39 : vector<1x128xf32>
    %41 = math.exp %40 : vector<1x128xf32>
    %cst_22 = arith.constant 1.000000e+00 : f32
    %42 = vector.broadcast %cst_22 : f32 to vector<1x128xf32>
    %43 = arith.addf %42, %41 : vector<1x128xf32>
    %44 = arith.divf %42, %43 : vector<1x128xf32>
    %c0_23 = arith.constant 0 : index
    %c0_24 = arith.constant 0 : index
    %45 = vector.load %arg10[%c0_23, %c0_24] : memref<1x128xf32, #tpu.memory_space<vmem>>, vector<1x128xf32>
    tpu.vector_store %arg10[%c0_23, %c0_24], %44 {strides = array<i32>} : memref<1x128xf32, #tpu.memory_space<vmem>>, vector<1x128xf32>,
    return
  }
  func.func @transform_0(%arg0: i32) -> (i32, i32) {
    %c0_i32 = arith.constant 0 : i32
    %c0_i32_0 = arith.constant 0 : i32
    return %c0_i32, %arg0 : i32, i32
  }
  func.func @transform_1(%arg0: i32) -> (i32, i32) {
    %c0_i32 = arith.constant 0 : i32
    %c0_i32_0 = arith.constant 0 : i32
    %c0_i32_1 = arith.constant 0 : i32
    return %c0_i32, %c0_i32_0 : i32, i32
  }
  func.func @transform_2(%arg0: i32) -> (i32, i32) {
    %c0_i32 = arith.constant 0 : i32
    %c0_i32_0 = arith.constant 0 : i32
    %c0_i32_1 = arith.constant 0 : i32
    return %c0_i32, %c0_i32_0 : i32, i32
  }
  func.func @transform_3(%arg0: i32) -> (i32, i32) {
    %c0_i32 = arith.constant 0 : i32
    %c0_i32_0 = arith.constant 0 : i32
    %c0_i32_1 = arith.constant 0 : i32
    return %c0_i32, %c0_i32_0 : i32, i32
  }
  func.func @transform_4(%arg0: i32) -> (i32, i32) {
    %c0_i32 = arith.constant 0 : i32
    %c0_i32_0 = arith.constant 0 : i32
    %c0_i32_1 = arith.constant 0 : i32
    return %c0_i32, %c0_i32_0 : i32, i32
  }
  func.func @transform_5(%arg0: i32) -> (i32, i32) {
    %c0_i32 = arith.constant 0 : i32
    %c0_i32_0 = arith.constant 0 : i32
    %c0_i32_1 = arith.constant 0 : i32
    return %c0_i32, %c0_i32_0 : i32, i32
  }
  func.func @transform_6(%arg0: i32) -> (i32, i32) {
    %c0_i32 = arith.constant 0 : i32
    %c0_i32_0 = arith.constant 0 : i32
    %c0_i32_1 = arith.constant 0 : i32
    return %c0_i32, %c0_i32_0 : i32, i32
  }
  func.func @transform_7(%arg0: i32) -> (i32, i32) {
    %c0_i32 = arith.constant 0 : i32
    %c0_i32_0 = arith.constant 0 : i32
    %c0_i32_1 = arith.constant 0 : i32
    return %c0_i32, %c0_i32_0 : i32, i32
  }
  func.func @transform_8(%arg0: i32) -> (i32, i32) {
    %c0_i32 = arith.constant 0 : i32
    %c0_i32_0 = arith.constant 0 : i32
    %c0_i32_1 = arith.constant 0 : i32
    return %c0_i32, %c0_i32_0 : i32, i32
  }
  func.func @transform_9(%arg0: i32) -> (i32, i32) {
    %c0_i32 = arith.constant 0 : i32
    %c0_i32_0 = arith.constant 0 : i32
    return %c0_i32, %arg0 : i32, i32
  }
}

</mosaic_0001>

<bundles_post_ra>
// kernel: dummy_discriminator.1
= control target key start
LH: loop header
LB: loop body
LE: loop exit
PB: predicated region body
PF: predicated region fallthrough
CT: control target
= control target key end

     0   :  { %v948_v0 = vmov 1   ;;  %v949_v1 = vmov 0   ;;  %vm183_vm0 = vcmask 261120   ;;  %v59_v53 = vlaneseq  ;;  %s1257_s1 = inlined_call_operand.vmem [shape: f32[32,2], index: 1, kind: input, shape index: {}]   ;;  %s1258_s8 = inlined_call_operand.<no memory space> [shape: f32[1,1], index: 8, kind: input, shape index: {}]   ;;  %s1259_s2 = inlined_call_operand.vmem [shape: f32[32,1], index: 2, kind: input, shape index: {}]   ;;  %s1260_s4 = inlined_call_operand.vmem [shape: f32[64,1], index: 4, kind: input, shape index: {}]   ;;  %s1261_s3 = inlined_call_operand.vmem [shape: f32[64,32], index: 3, kind: input, shape index: {}]   ;;  %s1262_s6 = inlined_call_operand.vmem [shape: f32[128,1], index: 6, kind: input, shape index: {}]   ;;  %s1263_s7 = inlined_call_operand.vmem [shape: f32[128,1], index: 7, kind: input, shape index: {}]   ;;  %s1264_s0 = inlined_call_operand.vmem [shape: f32[2,128], index: 0, kind: input, shape index: {}]   ;;  %s1265_s5 = inlined_call_operand.vmem [shape: f32[128,64], index: 5, kind: input, shape index: {}]   ;;  %s1266_s9 = inlined_call_operand.vmem [shape: f32[1,128], index: 9, kind: output, shape index: {}]  }
   0x1   :  { %937 = vset.pattern.permute.xlu0 %v948_v0  ;;  %938 = vset.pattern.permute.xlu1 %v949_v1  ;;  %v38_v2 = vld [vmem:[%s1257_s1 + $0x18] sm:$0xff]  ;;  %v37_v3 = vld [vmem:[%s1257_s1 + $0x10] sm:$0xff]  ;;  %v14_v4 = vstv %s1258_s8  ;;  %v36_v5 = vld [vmem:[%s1257_s1 + $0x8] sm:$0xff]  ;;  %vm433_vm1 = vcmask 523264  }
   0x2   :  { %80 = vperm.xlu0 %937, %v38_v2   ;;  %51 = vperm.xlu1 %938, %v37_v3   ;;  %15 = vst [vmem:[#allocation2] sm:$0x1] %v14_v4  ;;  %v35_v6 = vld [vmem:[%s1257_s1] sm:$0xff]  ;;  %v98_v7 = vld [vmem:[%s1259_s2 + $0x18] sm:$0xff]  ;;  %v96_v8 = vld [vmem:[%s1259_s2 + $0x8] sm:$0xff]  ;;  %v1151_v54 = vshrl.u32 %v59_v53, 7 }
   0x3   :  { %v142_v9 = vld [vmem:[%s1260_s4 + $0x38] sm:$0xff]  ;;  %v97_v10 = vld [vmem:[%s1259_s2 + $0x10] sm:$0xff]  ;;  %v140_v11 = vld [vmem:[%s1260_s4 + $0x28] sm:$0xff] }
   0x4   :  { %v95_v12 = vld [vmem:[%s1259_s2] sm:$0xff]  ;;  %v138_v13 = vld [vmem:[%s1260_s4 + $0x18] sm:$0xff]  ;;  %v141_v15 = vld [vmem:[%s1260_s4 + $0x30] sm:$0xff]  ;;  %v85_v57 = vsub.s32 1, %v1151_v54  ;;  %v61_v58 = vsub.s32 0, %v1151_v54 }
   0x5   :  { %v127_v14 = vld [vmem:[%s1261_s3] sm:$0xff]  ;;  %v136_v16 = vld [vmem:[%s1260_s4 + $0x8] sm:$0xff]  ;;  %v137_v19 = vld [vmem:[%s1260_s4 + $0x10] sm:$0xff] }
   0x6   :  { %939 = vset.pattern.permute.xlu1 %v948_v0  ;;  %72 = vperm.xlu0 %937, %v36_v5   ;;  %v139_v17 = vld [vmem:[%s1260_s4 + $0x20] sm:$0xff]  ;;  %v339_v20 = vld [vmem:[%s1262_s6 + $0x10] sm:$0xff]  ;;  %v338_v23 = vld [vmem:[%s1262_s6 + $0x8] sm:$0xff] }
   0x7   :  { %76 = vperm.xlu1 %939, %v37_v3   ;;  %867 = vmatprep.mubr.msk.f32.mxu0 %vm183_vm0, %v127_v14  ;;  %v337_v18 = vld [vmem:[%s1262_s6] sm:$0xff]  ;;  %v340_v25 = vld [vmem:[%s1262_s6 + $0x18] sm:$0xff]  ;;  %v342_v26 = vld [vmem:[%s1262_s6 + $0x28] sm:$0xff] }
   0x8   :  { %v135_v21 = vld [vmem:[%s1260_s4] sm:$0xff]  ;;  %v644_v27 = vld [vmem:[%s1263_s7 + $0x8] sm:$0xff]  ;;  %v343_v28 = vld [vmem:[%s1262_s6 + $0x30] sm:$0xff] }
   0x9   :  { %v643_v22 = vld [vmem:[%s1263_s7] sm:$0xff]  ;;  %v645_v29 = vld [vmem:[%s1263_s7 + $0x10] sm:$0xff]  ;;  %v344_v30 = vld [vmem:[%s1262_s6 + $0x38] sm:$0xff] }
   0xa   :  { %941 = vset.pattern.permute.xlu0 %v949_v1  ;;  %v341_v24 = vld [vmem:[%s1262_s6 + $0x20] sm:$0xff]  ;;  %v646_v31 = vld [vmem:[%s1263_s7 + $0x18] sm:$0xff]  ;;  %v346_v34 = vld [vmem:[%s1262_s6 + $0x48] sm:$0xff] }
   0xb   :  { %940 = vset.pattern.permute.xlu1 %v949_v1  ;;  %56 = vperm.xlu0 %941, %v38_v2   ;;  %v345_v32 = vld [vmem:[%s1262_s6 + $0x40] sm:$0xff]  ;;  %v648_v35 = vld [vmem:[%s1263_s7 + $0x28] sm:$0xff]  ;;  %v347_v36 = vld [vmem:[%s1262_s6 + $0x50] sm:$0xff] }
   0xc   :  { %46 = vperm.xlu1 %940, %v36_v5   ;;  %v647_v33 = vld [vmem:[%s1263_s7 + $0x20] sm:$0xff]  ;;  %v649_v37 = vld [vmem:[%s1263_s7 + $0x30] sm:$0xff]  ;;  %v348_v38 = vld [vmem:[%s1262_s6 + $0x58] sm:$0xff] }
   0xd   :  { %v650_v39 = vld [vmem:[%s1263_s7 + $0x38] sm:$0xff]  ;;  %v349_v40 = vld [vmem:[%s1262_s6 + $0x60] sm:$0xff]  ;;  %v350_v42 = vld [vmem:[%s1262_s6 + $0x68] sm:$0xff] }
   0xe   :  { %v651_v41 = vld [vmem:[%s1263_s7 + $0x40] sm:$0xff]  ;;  %v652_v43 = vld [vmem:[%s1263_s7 + $0x48] sm:$0xff]  ;;  %v351_v44 = vld [vmem:[%s1262_s6 + $0x70] sm:$0xff] }
   0xf   :  { %41 = vperm.xlu0 %941, %v35_v6   ;;  %v653_v45 = vld [vmem:[%s1263_s7 + $0x50] sm:$0xff]  ;;  %v352_v46 = vld [vmem:[%s1262_s6 + $0x78] sm:$0xff]  ;;  %v655_v49 = vld [vmem:[%s1263_s7 + $0x60] sm:$0xff] }
  0x10   :  { %116 = vperm.xlu1 %940, %v98_v7   ;;  %v654_v47 = vld [vmem:[%s1263_s7 + $0x58] sm:$0xff]  ;;  %v657_v48 = vld [vmem:[%s1263_s7 + $0x70] sm:$0xff]  ;;  %v776_v50 = vld [vmem:[#allocation2] sm:$0x1] }
  0x11   :  { %v656_v51 = vld [vmem:[%s1263_s7 + $0x68] sm:$0xff]  ;;  %v658_v52 = vld [vmem:[%s1263_s7 + $0x78] sm:$0xff]  ;;  %v34_v60 = vld [vmem:[%s1264_s0] sm:$0x3] }
  0x12   :  { %v86_v62 = vrot.slane %v34_v60, %v85_v57  ;;  %v62_v63 = vrot.slane %v34_v60, %v61_v58 }
  0x13   :  { %106 = vperm.xlu0 %941, %v96_v8  }
  0x14   :  { %942 = vset.pattern.permute.xlu1 %v948_v0 }
  0x15   :  { %68 = vperm.xlu1 %942, %v35_v6  }
  0x17   :  { %180 = vperm.xlu0 %941, %v142_v9  }
  0x19   :  { %943 = vset.pattern.permute.xlu1 %v949_v1 }
  0x1a   :  { %111 = vperm.xlu1 %943, %v97_v10  }
  0x1b   :  { %170 = vperm.xlu0 %941, %v140_v11  }
  0x1e   :  { %101 = vperm.xlu1 %943, %v95_v12  }
  0x1f   :  { %160 = vperm.xlu0 %941, %v138_v13  }
  0x22   :  { %175 = vperm.xlu1 %943, %v141_v15  }
  0x23   :  { %150 = vperm.xlu0 %941, %v136_v16  }
  0x26   :  { %165 = vperm.xlu1 %943, %v139_v17  }
  0x27   :  { %355 = vperm.xlu0 %941, %v337_v18  }
  0x2a   :  { %155 = vperm.xlu1 %943, %v137_v19  }
  0x2b   :  { %365 = vperm.xlu0 %941, %v339_v20  }
  0x2e   :  { %145 = vperm.xlu1 %943, %v135_v21  }
  0x2f   :  { %661 = vperm.xlu0 %941, %v643_v22  }
  0x32   :  { %360 = vperm.xlu1 %943, %v338_v23  }
  0x33   :  { %375 = vperm.xlu0 %941, %v341_v24  }
  0x36   :  { %370 = vperm.xlu1 %943, %v340_v25  }
  0x37   :  { %380 = vperm.xlu0 %941, %v342_v26  }
  0x3a   :  { %666 = vperm.xlu1 %943, %v644_v27  }
  0x3b   :  { %385 = vperm.xlu0 %941, %v343_v28   ;;  %v128_v28 = vld [vmem:[%s1261_s3 + $0x8] sm:$0xff] }
  0x3e   :  { %671 = vperm.xlu1 %943, %v645_v29   ;;  %v129_v29 = vld [vmem:[%s1261_s3 + $0x10] sm:$0xff] }
  0x3f   :  { %390 = vperm.xlu0 %941, %v344_v30   ;;  %v130_v30 = vld [vmem:[%s1261_s3 + $0x18] sm:$0xff] }
  0x42   :  { %676 = vperm.xlu1 %943, %v646_v31   ;;  %v131_v31 = vld [vmem:[%s1261_s3 + $0x20] sm:$0xff] }
  0x43   :  { %395 = vperm.xlu0 %941, %v345_v32   ;;  %v132_v32 = vld [vmem:[%s1261_s3 + $0x28] sm:$0xff] }
  0x46   :  { %681 = vperm.xlu1 %943, %v647_v33   ;;  %v133_v33 = vld [vmem:[%s1261_s3 + $0x30] sm:$0xff] }
  0x47   :  { %400 = vperm.xlu0 %941, %v346_v34   ;;  %v134_v34 = vld [vmem:[%s1261_s3 + $0x38] sm:$0xff] }
  0x4a   :  { %686 = vperm.xlu1 %943, %v648_v35   ;;  %v321_v35 = vld [vmem:[%s1265_s5] sm:$0xff] }
  0x4b   :  { %405 = vperm.xlu0 %941, %v347_v36   ;;  %v327_v36 = vld [vmem:[%s1265_s5 + $0x30] sm:$0xff] }
  0x4c   :  { %904 = vmatprep.mubr.msk.f32.mxu1 %vm433_vm1, %v327_v36 }
  0x4e   :  { %691 = vperm.xlu1 %943, %v649_v37  }
  0x4f   :  { %410 = vperm.xlu0 %941, %v348_v38  }
  0x52   :  { %696 = vperm.xlu1 %943, %v650_v39  }
  0x53   :  { %415 = vperm.xlu0 %941, %v349_v40  }
  0x56   :  { %701 = vperm.xlu1 %943, %v651_v41  }
  0x57   :  { %420 = vperm.xlu0 %941, %v350_v42  }
  0x5a   :  { %706 = vperm.xlu1 %943, %v652_v43  }
  0x5b   :  { %425 = vperm.xlu0 %941, %v351_v44  }
  0x5e   :  { %711 = vperm.xlu1 %943, %v653_v45  }
  0x5f   :  { %430 = vperm.xlu0 %941, %v352_v46  }
  0x62   :  { %716 = vperm.xlu1 %943, %v654_v47  }
  0x63   :  { %731 = vperm.xlu0 %941, %v657_v48  }
  0x66   :  { %721 = vperm.xlu1 %943, %v655_v49  }
  0x67   :  { %779 = vperm.xlu0 %941, %v776_v50  }
  0x6a   :  { %726 = vperm.xlu1 %943, %v656_v51  }
  0x6e   :  { %736 = vperm.xlu1 %943, %v658_v52  }
  0x7d   :  { %v52_v55 = vpop.permute.xlu1 %51  ;;  %v81_v56 = vpop.permute.xlu0 %80 }
  0x7e   :  { %v90_v0 = vmul.f32 %v86_v62, %v81_v56  ;;  %v65_v13 = vmul.f32 %v62_v63, %v52_v55 }
  0x81   :  { %v73_v59 = vpop.permute.xlu0 %72 }
  0x82   :  { %v77_v61 = vpop.permute.xlu1 %76  ;;  %v88_v10 = vmul.f32 %v86_v62, %v73_v59 }
  0x83   :  { %v89_v9 = vmul.f32 %v86_v62, %v77_v61 }
  0x85   :  { %v93_v18 = vadd.f32 %v89_v9, %v65_v13  ;;  %v323_v9 = vld [vmem:[%s1265_s5 + $0x10] sm:$0xff]  ;;  %v325_v13 = vld [vmem:[%s1265_s5 + $0x20] sm:$0xff] }
  0x86   :  { %v57_v1 = vpop.permute.xlu0 %56 }
  0x87   :  { %v66_v2 = vmul.f32 %v62_v63, %v57_v1  ;;  %v47_v3 = vpop.permute.xlu1 %46 }
  0x88   :  { %v64_v11 = vmul.f32 %v62_v63, %v47_v3 }
  0x89   :  { %v94_v4 = vadd.f32 %v90_v0, %v66_v2 }
  0x8a   :  { %v42_v7 = vpop.permute.xlu0 %41  ;;  %v92_v16 = vadd.f32 %v88_v10, %v64_v11  ;;  %v329_v10 = vld [vmem:[%s1265_s5 + $0x40] sm:$0xff]  ;;  %v324_v11 = vld [vmem:[%s1265_s5 + $0x18] sm:$0xff] }
  0x8b   :  { %v117_v5 = vpop.permute.xlu1 %116  ;;  %v63_v15 = vmul.f32 %v62_v63, %v42_v7  ;;  %v322_v7 = vld [vmem:[%s1265_s5 + $0x8] sm:$0xff] }
  0x8c   :  { %v122_v6 = vadd.f32 %v117_v5, %v94_v4 }
  0x8e   :  { %v126_v8 = vmax.f32 %v122_v6, 0.0  ;;  %v107_v14 = vpop.permute.xlu0 %106 }
  0x8f   :  { %v120_v20 = vadd.f32 %v107_v14, %v92_v16  ;;  %v331_v14 = vld [vmem:[%s1265_s5 + $0x50] sm:$0xff]  ;;  %v332_v16 = vld [vmem:[%s1265_s5 + $0x58] sm:$0xff] }
  0x90   :  { %v69_v12 = vpop.permute.xlu1 %68  ;;  %859 = vmatprep.subr.mxu0 %v126_v8 }
  0x91   :  { %860 = vmatpush3.msra.mxu0 %v126_v8  ;;  %v87_v17 = vmul.f32 %v86_v62, %v69_v12  ;;  %v124_v25 = vmax.f32 %v120_v20, 0.0  ;;  %v328_v8 = vld [vmem:[%s1265_s5 + $0x38] sm:$0xff]  ;;  %v330_v12 = vld [vmem:[%s1265_s5 + $0x48] sm:$0xff] }
  0x92   :  { %v181_v39 = vpop.permute.xlu0 %180  ;;  %v336_v20 = vld [vmem:[%s1265_s5 + $0x78] sm:$0xff] }
  0x93   :  { %v91_v23 = vadd.f32 %v87_v17, %v63_v15  ;;  %v326_v15 = vld [vmem:[%s1265_s5 + $0x28] sm:$0xff]  ;;  %v333_v17 = vld [vmem:[%s1265_s5 + $0x60] sm:$0xff] }
  0x95   :  { %v112_v19 = vpop.permute.xlu1 %111 }
  0x96   :  { %v121_v21 = vadd.f32 %v112_v19, %v93_v18  ;;  %v171_v44 = vpop.permute.xlu0 %170  ;;  %v334_v18 = vld [vmem:[%s1265_s5 + $0x68] sm:$0xff]  ;;  %v335_v19 = vld [vmem:[%s1265_s5 + $0x70] sm:$0xff] }
  0x98   :  { %v125_v22 = vmax.f32 %v121_v21, 0.0 }
  0x99   :  { %v102_v24 = vpop.permute.xlu1 %101 }
  0x9a   :  { %v119_v26 = vadd.f32 %v102_v24, %v91_v23  ;;  %861 = vmatprep.subr.mxu0 %v125_v22  ;;  %v161_v53 = vpop.permute.xlu0 %160 }
  0x9b   :  { %862 = vmatpush3.msra.mxu0 %v125_v22 }
  0x9c   :  { %v123_v27 = vmax.f32 %v119_v26, 0.0  ;;  %863 = vmatprep.subr.mxu0 %v124_v25 }
  0x9d   :  { %864 = vmatpush3.msra.mxu0 %v124_v25  ;;  %v176_v41 = vpop.permute.xlu1 %175 }
  0x9e   :  { %865 = vmatprep.subr.mxu0 %v123_v27  ;;  %v151_v63 = vpop.permute.xlu0 %150 }
  0x9f   :  { %866 = vmatpush3.msra.mxu0 %v123_v27 }
  0xa0   :  { %868 = vmatmul.mubr.msk.f32.vlgmr.msra.gmra.mxu0 %vm183_vm0, %v128_v28 }
  0xa1   :  { %870 = vmatprep.mubr.msk.f32.mxu0 %vm183_vm0, %v129_v29  ;;  %v166_v46 = vpop.permute.xlu1 %165 }
  0xa2   :  { %v356_v21 = vpop.permute.xlu0 %355 }
  0xa4   :  { %871 = vmatmul.mubr.msk.f32.gmra.mxu0 %vm183_vm0, %v130_v30 }
  0xa5   :  { %873 = vmatprep.mubr.msk.f32.mxu0 %vm183_vm0, %v131_v31  ;;  %v156_v57 = vpop.permute.xlu1 %155 }
  0xa6   :  { %v366_v23 = vpop.permute.xlu0 %365 }
  0xa8   :  { %874 = vmatmul.mubr.msk.f32.gmra.mxu0 %vm183_vm0, %v132_v32 }
  0xa9   :  { %876 = vmatprep.mubr.msk.f32.mxu0 %vm183_vm0, %v133_v33  ;;  %v146_v2 = vpop.permute.xlu1 %145 }
  0xaa   :  { %v662_v25 = vpop.permute.xlu0 %661 }
  0xac   :  { %877 = vmatmul.mubr.msk.f32.gmra.mxu0 %vm183_vm0, %v134_v34 }
  0xad   :  { %895 = vmatprep.mubr.msk.f32.mxu0 %vm433_vm1, %v321_v35  ;;  %v361_v22 = vpop.permute.xlu1 %360 }
  0xae   :  { %v376_v27 = vpop.permute.xlu0 %375 }
  0xb1   :  { %v371_v24 = vpop.permute.xlu1 %370 }
  0xb2   :  { %v381_v29 = vpop.permute.xlu0 %380 }
  0xb5   :  { %v667_v26 = vpop.permute.xlu1 %666 }
  0xb6   :  { %v386_v31 = vpop.permute.xlu0 %385 }
  0xb9   :  { %v672_v28 = vpop.permute.xlu1 %671 }
  0xba   :  { %v391_v33 = vpop.permute.xlu0 %390 }
  0xbd   :  { %v677_v30 = vpop.permute.xlu1 %676 }
  0xbe   :  { %v396_v35 = vpop.permute.xlu0 %395 }
  0xc1   :  { %v682_v32 = vpop.permute.xlu1 %681 }
  0xc5   :  { %v687_v34 = vpop.permute.xlu1 %686 }
  0xc9   :  { %v692_v36 = vpop.permute.xlu1 %691 }
 0x160   :  { %v869_v37 = vpop.f32.mrf.mxu0 }
 0x161   :  { %v280_v0 = vadd.f32 %v869_v37, %v151_v63  ;;  %v401_v37 = vpop.permute.xlu0 %400 }
 0x162   :  { %v274_v38 = vpop.f32.mrf.mxu0 }
 0x163   :  { %v275_v3 = vadd.f32 %v274_v38, %v146_v2  ;;  %v314_v5 = vmax.f32 %v280_v0, 0.0  ;;  %v697_v38 = vpop.permute.xlu1 %696 }
 0x164   :  { %v872_v40 = vpop.f32.mrf.mxu0 }
 0x165   :  { %v290_v59 = vadd.f32 %v872_v40, %v161_v53  ;;  %v313_v6 = vmax.f32 %v275_v3, 0.0 }
 0x166   :  { %v284_v42 = vpop.f32.mrf.mxu0 }
 0x167   :  { %v285_v61 = vadd.f32 %v284_v42, %v156_v57  ;;  %v316_v1 = vmax.f32 %v290_v59, 0.0  ;;  %v702_v40 = vpop.permute.xlu1 %701 }
 0x168   :  { %v875_v43 = vpop.f32.mrf.mxu0 }
 0x169   :  { %v300_v50 = vadd.f32 %v875_v43, %v171_v44  ;;  %v315_v4 = vmax.f32 %v285_v61, 0.0 }
 0x16a   :  { %v294_v45 = vpop.f32.mrf.mxu0 }
 0x16b   :  { %v295_v55 = vadd.f32 %v294_v45, %v166_v46  ;;  %v318_v60 = vmax.f32 %v300_v50, 0.0  ;;  %v707_v50 = vpop.permute.xlu1 %706 }
 0x16c   :  { %v878_v47 = vpop.f32.mrf.mxu0 }
 0x16d   :  { %v310_v48 = vadd.f32 %v878_v47, %v181_v39  ;;  %v317_v62 = vmax.f32 %v295_v55, 0.0  ;;  %v406_v39 = vpop.permute.xlu0 %405 }
 0x16e   :  { %v304_v49 = vpop.f32.mrf.mxu0 }
 0x16f   :  { %v320_v51 = vmax.f32 %v310_v48, 0.0  ;;  %v305_v52 = vadd.f32 %v304_v49, %v176_v41 }
 0x171   :  { %v319_v56 = vmax.f32 %v305_v52, 0.0  ;;  %879 = vmatprep.subr.mxu0 %v320_v51  ;;  %919 = vmatprep.subr.mxu1 %v320_v51  ;;  %v411_v46 = vpop.permute.xlu0 %410 }
 0x172   :  { %880 = vmatpush3.msra.mxu0 %v320_v51  ;;  %927 = vmatpush3.msra.mxu1 %v320_v51 }
 0x173   :  { %881 = vmatprep.subr.mxu0 %v319_v56  ;;  %920 = vmatprep.subr.mxu1 %v319_v56 }
 0x174   :  { %882 = vmatpush3.msra.mxu0 %v319_v56  ;;  %928 = vmatpush3.msra.mxu1 %v319_v56 }
 0x175   :  { %883 = vmatprep.subr.mxu0 %v318_v60  ;;  %921 = vmatprep.subr.mxu1 %v318_v60 }
 0x176   :  { %884 = vmatpush3.msra.mxu0 %v318_v60  ;;  %929 = vmatpush3.msra.mxu1 %v318_v60 }
 0x177   :  { %885 = vmatprep.subr.mxu0 %v317_v62  ;;  %922 = vmatprep.subr.mxu1 %v317_v62 }
 0x178   :  { %886 = vmatpush3.msra.mxu0 %v317_v62  ;;  %930 = vmatpush3.msra.mxu1 %v317_v62  ;;  %v416_v62 = vpop.permute.xlu0 %415 }
 0x179   :  { %887 = vmatprep.subr.mxu0 %v316_v1  ;;  %923 = vmatprep.subr.mxu1 %v316_v1 }
 0x17a   :  { %888 = vmatpush3.msra.mxu0 %v316_v1  ;;  %931 = vmatpush3.msra.mxu1 %v316_v1 }
 0x17b   :  { %889 = vmatprep.subr.mxu0 %v315_v4  ;;  %924 = vmatprep.subr.mxu1 %v315_v4 }
 0x17c   :  { %890 = vmatpush3.msra.mxu0 %v315_v4  ;;  %932 = vmatpush3.msra.mxu1 %v315_v4 }
 0x17d   :  { %891 = vmatprep.subr.mxu0 %v314_v5  ;;  %925 = vmatprep.subr.mxu1 %v314_v5 }
 0x17e   :  { %892 = vmatpush3.msra.mxu0 %v314_v5  ;;  %933 = vmatpush3.msra.mxu1 %v314_v5 }
 0x17f   :  { %893 = vmatprep.subr.mxu0 %v313_v6  ;;  %926 = vmatprep.subr.mxu1 %v313_v6 }
 0x180   :  { %894 = vmatpush3.msra.mxu0 %v313_v6  ;;  %934 = vmatpush3.msra.mxu1 %v313_v6 }
 0x181   :  { %896 = vmatmul.mubr.msk.f32.vlgmr.msra.gmra.mxu0 %vm433_vm1, %v322_v7  ;;  %905 = vmatmul.mubr.msk.f32.vlgmr.msra.gmra.mxu1 %vm433_vm1, %v328_v8 }
 0x182   :  { %898 = vmatprep.mubr.msk.f32.mxu0 %vm433_vm1, %v323_v9  ;;  %907 = vmatprep.mubr.msk.f32.mxu1 %vm433_vm1, %v329_v10  ;;  %v712_v9 = vpop.permute.xlu1 %711 }
 0x185   :  { %899 = vmatmul.mubr.msk.f32.gmra.mxu0 %vm433_vm1, %v324_v11  ;;  %908 = vmatmul.mubr.msk.f32.gmra.mxu1 %vm433_vm1, %v330_v12 }
 0x186   :  { %901 = vmatprep.mubr.msk.f32.mxu0 %vm433_vm1, %v325_v13  ;;  %910 = vmatprep.mubr.msk.f32.mxu1 %vm433_vm1, %v331_v14 }
 0x189   :  { %902 = vmatmul.mubr.msk.f32.gmra.mxu0 %vm433_vm1, %v326_v15  ;;  %911 = vmatmul.mubr.msk.f32.gmra.mxu1 %vm433_vm1, %v332_v16 }
 0x18a   :  { %913 = vmatprep.mubr.msk.f32.mxu1 %vm433_vm1, %v333_v17 }
 0x18d   :  { %914 = vmatmul.mubr.msk.f32.gmra.mxu1 %vm433_vm1, %v334_v18 }
 0x18e   :  { %916 = vmatprep.mubr.msk.f32.mxu1 %vm433_vm1, %v335_v19 }
 0x191   :  { %917 = vmatmul.mubr.msk.f32.gmra.mxu1 %vm433_vm1, %v336_v20  ;;  %v421_v20 = vpop.permute.xlu0 %420 }
 0x241   :  { %v897_v41 = vpop.f32.mrf.mxu0  ;;  %v906_v42 = vpop.f32.mrf.mxu1 }
 0x242   :  { %v554_v43 = vadd.f32 %v897_v41, %v361_v22  ;;  %v584_v10 = vadd.f32 %v906_v42, %v391_v33 }
 0x243   :  { %v548_v44 = vpop.f32.mrf.mxu0  ;;  %v578_v45 = vpop.f32.mrf.mxu1 }
 0x244   :  { %v549_v47 = vadd.f32 %v548_v44, %v356_v21  ;;  %v628_v51 = vmax.f32 %v554_v43, 0.0  ;;  %v579_v6 = vadd.f32 %v578_v45, %v386_v31  ;;  %v634_v22 = vmax.f32 %v584_v10, 0.0  ;;  %v426_v44 = vpop.permute.xlu0 %425 }
 0x245   :  { %v900_v48 = vpop.f32.mrf.mxu0  ;;  %v909_v49 = vpop.f32.mrf.mxu1 }
 0x246   :  { %v627_v52 = vmax.f32 %v549_v47, 0.0  ;;  %v564_v53 = vadd.f32 %v900_v48, %v371_v24  ;;  %v740_v63 = vmul.f32 %v667_v26, %v628_v51  ;;  %v633_v16 = vmax.f32 %v579_v6, 0.0  ;;  %v717_v26 = vpop.permute.xlu1 %716 }
 0x247   :  { %v558_v55 = vpop.f32.mrf.mxu0  ;;  %v588_v56 = vpop.f32.mrf.mxu1 }
 0x248   :  { %v739_v57 = vmul.f32 %v662_v25, %v627_v52  ;;  %v559_v59 = vadd.f32 %v558_v55, %v366_v23  ;;  %v630_v0 = vmax.f32 %v564_v53, 0.0  ;;  %v589_v17 = vadd.f32 %v588_v56, %v396_v35  ;;  %v431_v56 = vpop.permute.xlu0 %430 }
 0x249   :  { %v903_v60 = vpop.f32.mrf.mxu0  ;;  %v912_v61 = vpop.f32.mrf.mxu1  ;;  %v594_v23 = vadd.f32 %v909_v49, %v401_v37 }
 0x24a   :  { %v629_v1 = vmax.f32 %v559_v59, 0.0  ;;  %v574_v2 = vadd.f32 %v903_v60, %v381_v29  ;;  %v755_v5 = vadd.f32 %v740_v63, %v739_v57  ;;  %v742_v12 = vmul.f32 %v677_v30, %v630_v0  ;;  %v722_v48 = vpop.permute.xlu1 %721 }
 0x24b   :  { %v568_v3 = vpop.f32.mrf.mxu0  ;;  %v598_v4 = vpop.f32.mrf.mxu1  ;;  %v746_v30 = vmul.f32 %v697_v38, %v634_v22  ;;  %v636_v41 = vmax.f32 %v594_v23, 0.0  ;;  %v604_v42 = vadd.f32 %v912_v61, %v411_v46 }
 0x24c   :  { %v741_v7 = vmul.f32 %v672_v28, %v629_v1  ;;  %v569_v8 = vadd.f32 %v568_v3, %v376_v27  ;;  %v632_v14 = vmax.f32 %v574_v2, 0.0  ;;  %v745_v28 = vmul.f32 %v692_v36, %v633_v16 }
 0x24d   :  { %v915_v11 = vpop.f32.mrf.mxu1  ;;  %v635_v27 = vmax.f32 %v589_v17, 0.0  ;;  %v599_v31 = vadd.f32 %v598_v4, %v406_v39  ;;  %v748_v37 = vmul.f32 %v707_v50, %v636_v41  ;;  %v732_v50 = vpop.permute.xlu0 %731 }
 0x24e   :  { %v756_v13 = vadd.f32 %v755_v5, %v741_v7  ;;  %v631_v15 = vmax.f32 %v569_v8, 0.0  ;;  %v744_v24 = vmul.f32 %v687_v34, %v632_v14  ;;  %v638_v34 = vmax.f32 %v604_v42, 0.0  ;;  %v727_v60 = vpop.permute.xlu1 %726 }
 0x24f   :  { %v608_v21 = vpop.f32.mrf.mxu1  ;;  %v747_v35 = vmul.f32 %v702_v40, %v635_v27  ;;  %v614_v52 = vadd.f32 %v915_v11, %v421_v20 }
 0x250   :  { %v743_v18 = vmul.f32 %v682_v32, %v631_v15  ;;  %v757_v19 = vadd.f32 %v756_v13, %v742_v12  ;;  %v637_v32 = vmax.f32 %v599_v31, 0.0  ;;  %v609_v47 = vadd.f32 %v608_v21, %v416_v62 }
 0x251   :  { %v918_v33 = vpop.f32.mrf.mxu1  ;;  %v750_v38 = vmul.f32 %v717_v26, %v638_v34  ;;  %v640_v46 = vmax.f32 %v614_v52, 0.0  ;;  %v780_v12 = vpop.permute.xlu0 %779 }
 0x252   :  { %v758_v25 = vadd.f32 %v757_v19, %v743_v18  ;;  %v749_v36 = vmul.f32 %v712_v9, %v637_v32  ;;  %v639_v55 = vmax.f32 %v609_v47, 0.0  ;;  %v624_v59 = vadd.f32 %v918_v33, %v431_v56  ;;  %v737_v4 = vpop.permute.xlu1 %736 }
 0x253   :  { %v618_v51 = vpop.f32.mrf.mxu1  ;;  %v752_v62 = vmul.f32 %v727_v60, %v640_v46  ;;  %v785_v14 = vrot.slane %v780_v12, %v61_v58 }
 0x254   :  { %v759_v29 = vadd.f32 %v758_v25, %v744_v24  ;;  %v619_v39 = vadd.f32 %v618_v51, %v426_v44  ;;  %v751_v40 = vmul.f32 %v722_v48, %v639_v55  ;;  %v642_v1 = vmax.f32 %v624_v59, 0.0 }
 0x256   :  { %v760_v43 = vadd.f32 %v759_v29, %v745_v28  ;;  %v641_v63 = vmax.f32 %v619_v39, 0.0  ;;  %v754_v5 = vmul.f32 %v737_v4, %v642_v1 }
 0x258   :  { %v761_v45 = vadd.f32 %v760_v43, %v746_v30  ;;  %v753_v2 = vmul.f32 %v732_v50, %v641_v63 }
 0x25a   :  { %v762_v49 = vadd.f32 %v761_v45, %v747_v35 }
 0x25c   :  { %v763_v53 = vadd.f32 %v762_v49, %v748_v37 }
 0x25e   :  { %v764_v57 = vadd.f32 %v763_v53, %v749_v36 }
 0x260   :  { %v765_v61 = vadd.f32 %v764_v57, %v750_v38 }
 0x262   :  { %v766_v0 = vadd.f32 %v765_v61, %v751_v40 }
 0x264   :  { %v767_v3 = vadd.f32 %v766_v0, %v752_v62 }
 0x266   :  { %v768_v6 = vadd.f32 %v767_v3, %v753_v2 }
 0x268   :  { %v769_v7 = vadd.f32 %v768_v6, %v754_v5 }
 0x26a   :  { %v770_v8 = vrot.slane %v769_v7, 4 }
 0x26c   :  { %v771_v9 = vadd.f32 %v770_v8, %v769_v7 }
 0x26e   :  { %v772_v10 = vrot.slane %v771_v9, 2 }
 0x270   :  { %v773_v11 = vadd.f32 %v772_v10, %v771_v9 }
 0x272   :  { %v774_v13 = vrot.slane %v773_v11, 1 }
 0x274   :  { %v775_v15 = vadd.f32 %v774_v13, %v773_v11 }
 0x276   :  { %v786_v16 = vadd.f32 %v785_v14, %v775_v15 }
 0x278   :  { %v822_v17 = vmul.f32 -1.442695, %v786_v16 }
 0x27a   :  { %944 = vpow2.f32 %v822_v17 }
 0x287   :  { %v945_v18 = vpop.eup %944 }
 0x288   :  { %v790_v19 = vadd.f32 1.0, %v945_v18 }
 0x28a   :  { %946 = vrcp.f32 %v790_v19 }
 0x297   :  { %v947_v20 = vpop.eup %946 }
 0x298   :  { %793 = vst [vmem:[%s1266_s9] sm:$0x1] %v947_v20 }

</bundles_post_ra>
